<compile_context>
chip_gen: v5e
topology: v5e:2x2
jax: 0.10.0
libtpu: 0.0.40
codegen_flags: <defaults>
</compile_context>

<pallas_src>
import jax
import jax.numpy as jnp
from jax import lax
from jax.experimental import pallas as pl
from jax.experimental.pallas import tpu as pltpu


def _round_up(x, m):
    return ((x + m - 1) // m) * m


def _lovasz_kernel(n_act_ref, gts_ref, tri_ref, pos_ref, prev_ref,
                   err_ref, gt_ref, out_ref):
    # n_act_ref: (1,)   int32 SMEM (scalar prefetch) -- number of active chunks
    # gts_ref  : (1,1)  f32 SMEM -- total number of positive labels
    # tri_ref  : (T,T)  bf16 VMEM resident -- upper-tri (incl.) cumsum operator
    # pos_ref  : (R,T)  f32 VMEM resident -- within-chunk 0-based position r*T+t
    # prev_ref : (R,1)  f32 VMEM -- exclusive global cumsum(gt) at each row start
    # err_ref  : (R,T)  f32 VMEM -- sorted (descending) hinge errors, chunk c
    # gt_ref   : (R,T)  bf16 VMEM -- labels permuted by the same sort, chunk c
    # out_ref  : (1,1,T) f32 -- per-chunk lane-dense partial loss
    R, T = err_ref.shape
    c = pl.program_id(0)
    n_active = n_act_ref[0]

    @pl.when(c >= n_active)
    def _():
        # Tail chunks: every element has err <= 0 -> relu kills it -> 0 loss.
        out_ref[...] = jnp.zeros_like(out_ref)

    @pl.when(c < n_active)
    def _():
        gts = gts_ref[0, 0]                    # scalar f32
        err = err_ref[...]                     # (R, T) f32
        gt = gt_ref[...]                       # (R, T) bf16 (0/1 exact)
        prev_cum = prev_ref[...]               # (R, 1) f32: cumsum(gt) before row start

        # intra-row inclusive cumsum via one MXU matmul (f32 accumulate, exact).
        intra = jnp.dot(gt, tri_ref[...], preferred_element_type=jnp.float32)  # (R,T)
        cum_gt = prev_cum + intra              # global inclusive cumsum of gt

        # jaccard: union = gts + cumsum(1-gt) = gts + (pos1 - cum_gt)
        base = (c * (R * T)).astype(jnp.float32)
        pos1 = base + 1.0 + pos_ref[...]       # 1-based global position
        union = gts + (pos1 - cum_gt)
        inter = gts - cum_gt
        r0 = pl.reciprocal(union, approx=True)         # EUP
        rcp = r0 * (2.0 - union * r0)                  # one Newton step (exact to ~1 ulp)
        jac = 1.0 - inter * rcp                        # (R, T)

        # grad[i] = jac[i] - jac[i-1]  (grad[0] = jac[0])
        prev_lane = pltpu.roll(jac, shift=1, axis=1)   # wrong only at lane 0
        # analytic jaccard of the element just before each row start
        row_start = base + pos_ref[:, 0:1]             # (R,1) 0-based pos of row start
        prev_union = jnp.where(row_start < 0.5, 1.0, gts + (row_start - prev_cum))
        prev_row_jac = jnp.where(row_start < 0.5, 0.0,
                                 1.0 - (gts - prev_cum) / prev_union)
        col = lax.broadcasted_iota(jnp.int32, (R, T), 1)
        prev = jnp.where(col == 0, prev_row_jac, prev_lane)
        grad = jac - prev

        contrib = jnp.maximum(err, 0.0) * grad
        # sublane (row) reduce only -> lane-dense (1,T) partial; summed in glue.
        out_ref[...] = jnp.sum(contrib, axis=0, keepdims=True).reshape(1, 1, T)


def lovasz_loss(logits, targets, *, lanes=128, rows_per_chunk=1024):
    """Binary Lovasz hinge loss, per_image=False, ignore=None (LovaszLoss.forward)."""
    lg = logits.reshape(-1).astype(jnp.float32)
    lb = targets.reshape(-1).astype(jnp.float32)
    P = lg.shape[0]

    signs = 2.0 * lb - 1.0
    errors = 1.0 - lg * signs
    gts = jnp.sum(lb).reshape(1, 1)                      # permutation invariant
    n_pos_err = jnp.sum(errors > 0.0).astype(jnp.int32)  # strictly-positive errors

    # TODO(synk): descending sort + permutation gather has no Pallas TPU primitive;
    # kept in plain JAX glue (it dominates wall time for large P).
    order = jnp.argsort(-errors)
    errors_sorted = errors[order]
    gt_sorted = lb[order]

    T = int(lanes)
    rows_needed = max(1, -(-P // T))
    R = min(int(rows_per_chunk), _round_up(rows_needed, 16))
    R = max(_round_up(R, 16), 16)                        # multiple of 16 (bf16 tiles)
    rows_pad = _round_up(rows_needed, R)
    P_pad = rows_pad * T
    num_chunks = rows_pad // R

    # Pad with zero-contribution entries: err <= 0 (relu kills it), label 0
    # (does not perturb gts nor the cumsums of earlier positions).
    pad = P_pad - P
    errors_sorted = jnp.pad(errors_sorted, (0, pad), constant_values=-1.0)
    gt_sorted = jnp.pad(gt_sorted, (0, pad), constant_values=0.0)
    err2 = errors_sorted.reshape(rows_pad, T)
    gt2 = gt_sorted.reshape(rows_pad, T).astype(jnp.bfloat16)   # 0/1 exact in bf16

    # Glue-side per-row exclusive gt prefix (tiny segment-sum: 1 value / 128 elems).
    row_tot = jnp.sum(gt_sorted.reshape(rows_pad, T), axis=1)
    row_prev = (jnp.cumsum(row_tot) - row_tot).reshape(rows_pad, 1).astype(jnp.float32)

    # Number of chunks that contain any strictly-positive error (rest skip).
    n_active = jnp.clip((n_pos_err + R * T - 1) // (R * T), 1, num_chunks)
    n_active = n_active.astype(jnp.int32).reshape(1)

    # (T, T) upper-triangular (inclusive) cumsum operator; 0/1 exact in bf16.
    tri = (jnp.arange(T)[:, None] <= jnp.arange(T)[None, :]).astype(jnp.bfloat16)
    # Within-chunk 0-based position matrix (hoisted iota, resident in VMEM).
    pos_local = (jnp.arange(R)[:, None] * T + jnp.arange(T)[None, :]).astype(jnp.float32)

    clamp = lambda c, n: (jnp.minimum(c, n[0] - 1), 0)

    partials = pl.pallas_call(
        _lovasz_kernel,
        out_shape=jax.ShapeDtypeStruct((num_chunks, 1, T), jnp.float32),
        grid_spec=pltpu.PrefetchScalarGridSpec(
            num_scalar_prefetch=1,
            grid=(num_chunks,),
            in_specs=[
                pl.BlockSpec(memory_space=pltpu.MemorySpace.SMEM),   # gts (1,1)
                pl.BlockSpec((T, T), lambda c, n: (0, 0)),           # tri (resident)
                pl.BlockSpec((R, T), lambda c, n: (0, 0)),           # pos (resident)
                pl.BlockSpec((R, 1), clamp),                         # row_prev chunk
                pl.BlockSpec((R, T), clamp),                         # sorted errors chunk
                pl.BlockSpec((R, T), clamp),                         # sorted labels chunk (bf16)
            ],
            out_specs=pl.BlockSpec((1, 1, T), lambda c, n: (c, 0, 0)),
        ),
        compiler_params=pltpu.CompilerParams(
            dimension_semantics=("parallel",),      # carry-free -> megacore-safe (v7x)
            vmem_limit_bytes=32 * 1024 * 1024,
        ),
    )(n_active, gts, tri, pos_local, row_prev, err2, gt2)

    return jnp.sum(partials)


def _lovasz_loss_ref(logits, targets):
    """Pure-JAX reference (mirrors the PyTorch lovasz_hinge, per_image=False)."""
    lg = logits.reshape(-1).astype(jnp.float32)
    lb = targets.reshape(-1).astype(jnp.float32)
    signs = 2.0 * lb - 1.0
    errors = 1.0 - lg * signs
    order = jnp.argsort(-errors)
    errors_sorted = errors[order]
    gt_sorted = lb[order]
    gts = gt_sorted.sum()
    intersection = gts - jnp.cumsum(gt_sorted)
    union = gts + jnp.cumsum(1.0 - gt_sorted)
    jaccard = 1.0 - intersection / union
    grad = jnp.concatenate([jaccard[:1], jaccard[1:] - jaccard[:-1]])
    return jnp.sum(jnp.maximum(errors_sorted, 0.0) * grad)


if __name__ == "__main__":
    key = jax.random.PRNGKey(0)
    k1, k2, k3, k4 = jax.random.split(key, 4)

    # Test 1: small, single chunk (B, H, W) = (2, 16, 16).
    B, H, W = 2, 16, 16
    logits = jax.random.normal(k1, (B, H, W), dtype=jnp.float32)
    targets = (jax.random.uniform(k2, (B, H, W)) < 0.5).astype(jnp.float32)
    loss = lovasz_loss(logits, targets)
    jax.block_until_ready(loss)
    ref = _lovasz_loss_ref(logits, targets)
    assert jnp.allclose(loss, ref, rtol=1e-4, atol=1e-4), (float(loss), float(ref))

    # Test 2: multi-chunk, P not a multiple of 128 (exercises cross-chunk
    # prefixes, row-boundary fix-up and padding).
    B2, H2, W2 = 3, 37, 53
    logits2 = jax.random.normal(k3, (B2, H2, W2), dtype=jnp.float32)
    targets2 = (jax.random.uniform(k4, (B2, H2, W2)) < 0.5).astype(jnp.float32)
    loss2 = lovasz_loss(logits2, targets2, rows_per_chunk=16)
    jax.block_until_ready(loss2)
    ref2 = _lovasz_loss_ref(logits2, targets2)
    assert jnp.allclose(loss2, ref2, rtol=1e-4, atol=1e-4), (float(loss2), float(ref2))

    # Test 3: confident correct predictions -> most errors <= 0 (exercises the
    # early-exit / zero-partial path).
    logits3 = 4.0 * (2.0 * targets2 - 1.0) + 0.3 * jax.random.normal(k3, (B2, H2, W2))
    loss3 = lovasz_loss(logits3, targets2, rows_per_chunk=16)
    jax.block_until_ready(loss3)
    ref3 = _lovasz_loss_ref(logits3, targets2)
    assert jnp.allclose(loss3, ref3, rtol=1e-4, atol=1e-4), (float(loss3), float(ref3))

    print("KERNEL_OK")
</pallas_src>

<mosaic_0001>
module attributes {stable_mosaic.version = 11 : i64} {
  func.func @_lovasz_kernel(%arg0: i32, %arg1: memref<1xi32, #tpu.memory_space<smem>>, %arg2: memref<1x1xf32, #tpu.memory_space<smem>>, %arg3: memref<128x128xbf16, #tpu.memory_space<vmem>>, %arg4: memref<16x128xf32, #tpu.memory_space<vmem>>, %arg5: memref<16x1xf32, #tpu.memory_space<vmem>>, %arg6: memref<16x128xf32, #tpu.memory_space<vmem>>, %arg7: memref<16x128xbf16, #tpu.memory_space<vmem>>, %arg8: memref<1x1x128xf32, #tpu.memory_space<vmem>>) attributes {dimension_semantics = [#tpu.dimension_semantics<parallel>], iteration_bounds = array<i64: 1>, scalar_prefetch = 1 : i64, scratch_operands = 0 : i64, tpu.core_type = #tpu.core_type<tc>, window_params = [{transform_indices = @transform_0, window_bounds = array<i64: 1, 1>}, {pipeline_mode = #tpu.pipeline_mode<synchronous>, transform_indices = @transform_1, window_bounds = array<i64: 128, 128>}, {pipeline_mode = #tpu.pipeline_mode<synchronous>, transform_indices = @transform_2, window_bounds = array<i64: 16, 128>}, {transform_indices = @transform_3, window_bounds = array<i64: 16, 1>}, {transform_indices = @transform_4, window_bounds = array<i64: 16, 128>}, {transform_indices = @transform_5, window_bounds = array<i64: 16, 128>}, {transform_indices = @transform_6, window_bounds = array<i64: 1, 1, 128>}]} {
    %c0 = arith.constant 0 : index
    %0 = memref.load %arg1[%c0] : memref<1xi32, #tpu.memory_space<smem>>
    %1 = arith.cmpi sge, %arg0, %0 : i32
    %2 = arith.extui %1 : i1 to i32
    %c0_i32 = arith.constant 0 : i32
    %3 = arith.cmpi ne, %2, %c0_i32 : i32
    scf.if %3 {
      %cst = arith.constant 0.000000e+00 : f32
      %7 = vector.broadcast %cst : f32 to vector<1x1x128xf32>
      %c0_1 = arith.constant 0 : index
      %c0_2 = arith.constant 0 : index
      %c0_3 = arith.constant 0 : index
      %8 = vector.load %arg8[%c0_1, %c0_2, %c0_3] : memref<1x1x128xf32, #tpu.memory_space<vmem>>, vector<1x1x128xf32>
      tpu.vector_store %arg8[%c0_1, %c0_2, %c0_3], %7 {strides = array<i32>} : memref<1x1x128xf32, #tpu.memory_space<vmem>>, vector<1x1x128xf32>,
    } else {
    }
    %4 = arith.cmpi slt, %arg0, %0 : i32
    %5 = arith.extui %4 : i1 to i32
    %c0_i32_0 = arith.constant 0 : i32
    %6 = arith.cmpi ne, %5, %c0_i32_0 : i32
    scf.if %6 {
      %c0_1 = arith.constant 0 : index
      %c0_2 = arith.constant 0 : index
      %7 = memref.load %arg2[%c0_1, %c0_2] : memref<1x1xf32, #tpu.memory_space<smem>>
      %c0_3 = arith.constant 0 : index
      %c0_4 = arith.constant 0 : index
      %8 = vector.load %arg6[%c0_3, %c0_4] : memref<16x128xf32, #tpu.memory_space<vmem>>, vector<16x128xf32>
      %c0_5 = arith.constant 0 : index
      %c0_6 = arith.constant 0 : index
      %9 = vector.load %arg7[%c0_5, %c0_6] : memref<16x128xbf16, #tpu.memory_space<vmem>>, vector<16x128xbf16>
      %c0_7 = arith.constant 0 : index
      %c0_8 = arith.constant 0 : index
      %10 = vector.load %arg5[%c0_7, %c0_8] : memref<16x1xf32, #tpu.memory_space<vmem>>, vector<16x1xf32>
      %c0_9 = arith.constant 0 : index
      %c0_10 = arith.constant 0 : index
      %11 = vector.load %arg3[%c0_9, %c0_10] : memref<128x128xbf16, #tpu.memory_space<vmem>>, vector<128x128xbf16>
      %cst = arith.constant dense<0.000000e+00> : vector<16x128xf32>
      %12 = tpu.matmul %9, %11, %cst {dimension_numbers = #tpu.dot_dimension_numbers<[1], [0], [0], [1], [0, 0, 1, 1], [], []>} : vector<16x128xbf16>, vector<128x128xbf16>, vector<16x128xf32> -> vector<16x128xf32>
      %13 = vector.broadcast %10 : vector<16x1xf32> to vector<16x128xf32>
      %14 = arith.addf %13, %12 : vector<16x128xf32>
      %c2048_i32 = arith.constant 2048 : i32
      %15 = arith.muli %arg0, %c2048_i32 : i32
      %16 = arith.sitofp %15 : i32 to f32
      %cst_11 = arith.constant 1.000000e+00 : f32
      %17 = arith.addf %16, %cst_11 : f32
      %c0_12 = arith.constant 0 : index
      %c0_13 = arith.constant 0 : index
      %18 = vector.load %arg4[%c0_12, %c0_13] : memref<16x128xf32, #tpu.memory_space<vmem>>, vector<16x128xf32>
      %19 = vector.broadcast %17 : f32 to vector<16x128xf32>
      %20 = arith.addf %19, %18 : vector<16x128xf32>
      %21 = arith.subf %20, %14 : vector<16x128xf32>
      %22 = vector.broadcast %7 : f32 to vector<16x128xf32>
      %23 = arith.addf %22, %21 : vector<16x128xf32>
      %24 = vector.broadcast %7 : f32 to vector<16x128xf32>
      %25 = arith.subf %24, %14 : vector<16x128xf32>
      %26 = tpu.reciprocal %23 {approx = true} : vector<16x128xf32> -> vector<16x128xf32>
      %27 = arith.mulf %23, %26 : vector<16x128xf32>
      %cst_14 = arith.constant 2.000000e+00 : f32
      %28 = vector.broadcast %cst_14 : f32 to vector<16x128xf32>
      %29 = arith.subf %28, %27 : vector<16x128xf32>
      %30 = arith.mulf %26, %29 : vector<16x128xf32>
      %31 = arith.mulf %25, %30 : vector<16x128xf32>
      %cst_15 = arith.constant 1.000000e+00 : f32
      %32 = vector.broadcast %cst_15 : f32 to vector<16x128xf32>
      %33 = arith.subf %32, %31 : vector<16x128xf32>
      %c1_i32 = arith.constant 1 : i32
      %34 = tpu.dynamic_rotate %33 by %c1_i32 dim 1 : vector<16x128xf32>, i32 -> vector<16x128xf32>
      %c0_16 = arith.constant 0 : index
      %c0_17 = arith.constant 0 : index
      %35 = vector.load %arg4[%c0_16, %c0_17] : memref<16x128xf32, #tpu.memory_space<vmem>>, vector<16x1xf32>
      %36 = vector.broadcast %16 : f32 to vector<16x1xf32>
      %37 = arith.addf %36, %35 : vector<16x1xf32>
      %cst_18 = arith.constant 5.000000e-01 : f32
      %38 = vector.broadcast %cst_18 : f32 to vector<16x1xf32>
      %39 = arith.cmpf olt, %37, %38 : vector<16x1xf32>
      %40 = arith.subf %37, %10 : vector<16x1xf32>
      %41 = vector.broadcast %7 : f32 to vector<16x1xf32>
      %42 = arith.addf %41, %40 : vector<16x1xf32>
      %cst_19 = arith.constant 1.000000e+00 : f32
      %43 = vector.broadcast %cst_19 : f32 to vector<16x1xf32>
      %44 = arith.select %39, %43, %42 : vector<16x1xi1>, vector<16x1xf32>
      %cst_20 = arith.constant 5.000000e-01 : f32
      %45 = vector.broadcast %cst_20 : f32 to vector<16x1xf32>
      %46 = arith.cmpf olt, %37, %45 : vector<16x1xf32>
      %47 = vector.broadcast %7 : f32 to vector<16x1xf32>
      %48 = arith.subf %47, %10 : vector<16x1xf32>
      %49 = arith.divf %48, %44 : vector<16x1xf32>
      %cst_21 = arith.constant 1.000000e+00 : f32
      %50 = vector.broadcast %cst_21 : f32 to vector<16x1xf32>
      %51 = arith.subf %50, %49 : vector<16x1xf32>
      %cst_22 = arith.constant 0.000000e+00 : f32
      %52 = vector.broadcast %cst_22 : f32 to vector<16x1xf32>
      %53 = arith.select %46, %52, %51 : vector<16x1xi1>, vector<16x1xf32>
      %54 = tpu.iota {dimensions = array<i32: 1>} : vector<16x128xi32>
      %c0_i32_23 = arith.constant 0 : i32
      %55 = vector.broadcast %c0_i32_23 : i32 to vector<16x128xi32>
      %56 = arith.cmpi eq, %54, %55 : vector<16x128xi32>
      %57 = vector.shape_cast %53 : vector<16x1xf32> to vector<16x1xf32>
      %58 = vector.broadcast %57 : vector<16x1xf32> to vector<16x128xf32>
      %59 = arith.select %56, %58, %34 : vector<16x128xi1>, vector<16x128xf32>
      %60 = arith.subf %33, %59 : vector<16x128xf32>
      %cst_24 = arith.constant 0.000000e+00 : f32
      %61 = vector.broadcast %cst_24 : f32 to vector<16x128xf32>
      %62 = arith.maximumf %8, %61 : vector<16x128xf32>
      %63 = arith.mulf %62, %60 : vector<16x128xf32>
      %cst_25 = arith.constant dense<0.000000e+00> : vector<128xf32>
      %64 = vector.multi_reduction <add>, %63, %cst_25 [0] : vector<16x128xf32> to vector<128xf32>
      %65 = vector.shape_cast %64 : vector<128xf32> to vector<1x128xf32>
      %66 = vector.shape_cast %65 : vector<1x128xf32> to vector<1x1x128xf32>
      %c0_26 = arith.constant 0 : index
      %c0_27 = arith.constant 0 : index
      %c0_28 = arith.constant 0 : index
      %67 = vector.load %arg8[%c0_26, %c0_27, %c0_28] : memref<1x1x128xf32, #tpu.memory_space<vmem>>, vector<1x1x128xf32>
      tpu.vector_store %arg8[%c0_26, %c0_27, %c0_28], %66 {strides = array<i32>} : memref<1x1x128xf32, #tpu.memory_space<vmem>>, vector<1x1x128xf32>,
    } else {
    }
    return
  }
  func.func @transform_0(%arg0: i32, %arg1: memref<1xi32, #tpu.memory_space<smem>>) -> (i32, i32) {
    %c0_i32 = arith.constant 0 : i32
    %c0_i32_0 = arith.constant 0 : i32
    %c0_i32_1 = arith.constant 0 : i32
    return %c0_i32, %c0_i32_0 : i32, i32
  }
  func.func @transform_1(%arg0: i32, %arg1: memref<1xi32, #tpu.memory_space<smem>>) -> (i32, i32) {
    %c0_i32 = arith.constant 0 : i32
    %c0_i32_0 = arith.constant 0 : i32
    %c0_i32_1 = arith.constant 0 : i32
    return %c0_i32, %c0_i32_0 : i32, i32
  }
  func.func @transform_2(%arg0: i32, %arg1: memref<1xi32, #tpu.memory_space<smem>>) -> (i32, i32) {
    %c0_i32 = arith.constant 0 : i32
    %c0_i32_0 = arith.constant 0 : i32
    %c0_i32_1 = arith.constant 0 : i32
    return %c0_i32, %c0_i32_0 : i32, i32
  }
  func.func @transform_3(%arg0: i32, %arg1: memref<1xi32, #tpu.memory_space<smem>>) -> (i32, i32) {
    %c0 = arith.constant 0 : index
    %0 = memref.load %arg1[%c0] : memref<1xi32, #tpu.memory_space<smem>>
    %c1_i32 = arith.constant 1 : i32
    %1 = arith.subi %0, %c1_i32 : i32
    %2 = arith.minsi %arg0, %1 : i32
    %c0_i32 = arith.constant 0 : i32
    %c0_i32_0 = arith.constant 0 : i32
    return %2, %c0_i32 : i32, i32
  }
  func.func @transform_4(%arg0: i32, %arg1: memref<1xi32, #tpu.memory_space<smem>>) -> (i32, i32) {
    %c0 = arith.constant 0 : index
    %0 = memref.load %arg1[%c0] : memref<1xi32, #tpu.memory_space<smem>>
    %c1_i32 = arith.constant 1 : i32
    %1 = arith.subi %0, %c1_i32 : i32
    %2 = arith.minsi %arg0, %1 : i32
    %c0_i32 = arith.constant 0 : i32
    %c0_i32_0 = arith.constant 0 : i32
    return %2, %c0_i32 : i32, i32
  }
  func.func @transform_5(%arg0: i32, %arg1: memref<1xi32, #tpu.memory_space<smem>>) -> (i32, i32) {
    %c0 = arith.constant 0 : index
    %0 = memref.load %arg1[%c0] : memref<1xi32, #tpu.memory_space<smem>>
    %c1_i32 = arith.constant 1 : i32
    %1 = arith.subi %0, %c1_i32 : i32
    %2 = arith.minsi %arg0, %1 : i32
    %c0_i32 = arith.constant 0 : i32
    %c0_i32_0 = arith.constant 0 : i32
    return %2, %c0_i32 : i32, i32
  }
  func.func @transform_6(%arg0: i32, %arg1: memref<1xi32, #tpu.memory_space<smem>>) -> (i32, i32, i32) {
    %c0_i32 = arith.constant 0 : i32
    %c0_i32_0 = arith.constant 0 : i32
    %c0_i32_1 = arith.constant 0 : i32
    return %arg0, %c0_i32, %c0_i32_0 : i32, i32, i32
  }
}

</mosaic_0001>

<bundles_post_ra>
// kernel: tpu_custom_call.1
= control target key start
LH: loop header
LB: loop body
LE: loop exit
PB: predicated region body
PF: predicated region fallthrough
CT: control target
= control target key end

     0   :  { %s689_s0 = inlined_call_operand.<no memory space> [shape: s32[1], index: 0, kind: input, shape index: {}]   ;;  %s690_s1 = inlined_call_operand.<no memory space> [shape: f32[1,1], index: 1, kind: input, shape index: {}]   ;;  %s691_s2 = inlined_call_operand.hbm [shape: bf16[128,128], index: 2, kind: input, shape index: {}]   ;;  %s692_s3 = inlined_call_operand.vmem [shape: f32[16,128], index: 3, kind: input, shape index: {}]   ;;  %s693_s4 = inlined_call_operand.vmem [shape: f32[16,1], index: 4, kind: input, shape index: {}]   ;;  %s694_s5 = inlined_call_operand.hbm [shape: f32[16,128], index: 5, kind: input, shape index: {}]   ;;  %s695_s6 = inlined_call_operand.hbm [shape: bf16[16,128], index: 6, kind: input, shape index: {}]   ;;  %s696_s7 = inlined_call_operand.hbm [shape: f32[1,1,128], index: 7, kind: output, shape index: {}]  }
   0x1   :  { %13 = sst [smem:[#allocation4]] %s690_s1 }
   0x2   :  { %14 = vsyncpa [#allocation6], 0 }
   0x3   :  { %15 = vsyncpa [#allocation9], 0  ;;  %s383_s28 = sadd.s32 4294967295, %s689_s0 }
   0x4   :  { %16 = vsyncpa [#allocation7], 0  ;;  %p384_p0 = scmp.gt.s32.totalorder %s383_s28, 0  ;;  %s569_s29 = smov [#allocation8]  }
   0x5   :  { %s63_s30 = sshll.u32 %s569_s29, 4  ;;  %s23_s10 = sshll.u32 %s691_s2, 4  ;;  %s64_s30 = int_to_ptr.vmem [resolvable:$true] %s63_s30  ;;  %s24_s10 = int_to_ptr.hbm [resolvable:$true] %s23_s10 }
   0x6   :  { %s698_s28 = smov (%p384_p0, %s383_s28), 0  ;;  %s570_s15 = smov [#allocation5]  }
   0x7   :  { %s435_s11 = sshll.u32 %s698_s28, 4  ;;  %s25_s16 = sshll.u32 %s570_s15, 4  ;;  %s26_s16 = int_to_ptr.vmem [resolvable:$true] %s25_s16 }
   0x8   :  { %s60_s13 = scalar_lea.hbm %s694_s5, %s435_s11  ;;  %s471_s21 = scalar_lea.hbm %s694_s5, 16 }
   0x9   :  { %s61_s14 = sshll.u32 %s60_s13, 4  ;;  %s62_s14 = int_to_ptr.hbm [resolvable:$true] %s61_s14 }
   0xa   :  { %s467_s17 = sshra.s32 %s62_s14, 4  ;;  %s468_s17 = int_to_ptr.hbm [resolvable:$true] %s467_s17 }
   0xb   :  { %s469_s18 = scalar_lea.hbm %s468_s17, 16  ;;  %p472_p2 = scmp.lt.s32.totalorder %s468_s17, %s694_s5 }
   0xc   :  { %p470_p1 = scmp.ne.s32.totalorder %s468_s17, %s469_s18  ;;  %p473_p3 = scmp.lt.s32.totalorder %s471_s21, %s469_s18 }
   0xe   :  { %p474_p4 = por %p473_p3, %p472_p2 }
  0x10   :  { %p475_p5 = pnand %p474_p4, %p470_p1 }
  0x12   :  { %478 = shalt.err (!%p475_p5)
}
  0x13   :  { %s571_s23 = smov 128   ;;  %s572_s24 = smov 8  }
  0x14   :  { %69 = dma.hbm_to_vmem [thread:$0]  %s62_s14, 256, %s64_s30, [#allocation9], %s571_s23, %s571_s23, %s572_s24  }
  0x15   :  { %s573_s25 = smov 64   ;;  %s574_s26 = smov 4  }
  0x16   :  { %31 = dma.hbm_to_vmem [thread:$0]  %s24_s10, 1024, %s26_s16, [#allocation6], %s573_s25, %s573_s25, %s574_s26  }
  0x17   :  { %s436_s27 = sshll.u32 %s698_s28, 3  ;;  %s575_s11 = smov [#allocation10]  }
  0x18   :  { %s80_s9 = scalar_lea.hbm %s695_s6, %s436_s27  ;;  %s83_s1 = sshll.u32 %s575_s11, 4  ;;  %s84_s1 = int_to_ptr.vmem [resolvable:$true] %s83_s1 }
  0x19   :  { %s81_s12 = sshll.u32 %s80_s9, 4  ;;  %s519_s30 = scalar_lea.hbm %s695_s6, 8  ;;  %s82_s12 = int_to_ptr.hbm [resolvable:$true] %s81_s12 }
  0x1a   :  { %s515_s5 = sshra.s32 %s82_s12, 4  ;;  %s516_s5 = int_to_ptr.hbm [resolvable:$true] %s515_s5 }
  0x1b   :  { %s517_s13 = scalar_lea.hbm %s516_s5, 8  ;;  %p520_p7 = scmp.lt.s32.totalorder %s516_s5, %s695_s6 }
  0x1c   :  { %p518_p6 = scmp.ne.s32.totalorder %s516_s5, %s517_s13  ;;  %p521_p8 = scmp.lt.s32.totalorder %s519_s30, %s517_s13 }
  0x1e   :  { %p522_p9 = por %p521_p8, %p520_p7 }
  0x20   :  { %p523_p10 = pnand %p522_p9, %p518_p6 }
  0x22   :  { %526 = shalt.err (!%p523_p10)
}
  0x23   :  { %89 = dma.hbm_to_vmem [thread:$0]  %s82_s12, 128, %s84_s1, [#allocation9], %s573_s25, %s573_s25, %s574_s26  }
  0x24   :  { %563 = dma.done.wait [#allocation6], 1024  }
  0x25   :  { %564 = vsyncadd [#allocation6], 4294966272 }
  0x26   :  { %565 = dma.done.wait [#allocation9], 384  }
  0x27   :  { %566 = vsyncadd [#allocation9], 4294966912  ;;  %s393_s16 = sshll.u32 %s698_s28, 1  ;;  %p396_p12 = scmp.gt.s32.totalorder %s689_s0, 0 }
  0x28   :  { %p116_p11 = scmp.lt.s32.totalorder %s393_s16, 1 }
  0x29   :  { %139 = sbr.rel (%p396_p12) target bundleno = 48 (0x30), region = 41 }
  0x2a   :  { %s700_s16 = smov (!%p116_p11, %s393_s16), 1 }
  0x2b   :  { %s394_s18 = sshll.u32 %s700_s16, 3 }
  0x2c   :  { %s119_s21 = scalar_lea.vmem %s693_s4, %s394_s18 }
  0x2e   :  { %v576_v0 = vmov 0.0  }
  0x2f   :  { %140 = vst [vmem:[#allocation11] sm:$0x1] %v576_v0 }
  0x30 PF:  { %p398_p13 = scmp.le.s32.totalorder %s689_s0, 0 }
  0x31   :  { %s145_s0 = sld [smem:[#allocation4]] (!%p398_p13) }
  0x32   :  { %144 = sbr.rel (%p398_p13) target bundleno = 379 (0x17b), region = 45 }
  0x37   :  { %v445_v1 = vld [vmem:[#allocation5 + $0x38] sm:$0xff]  ;;  %v444_v2 = vld [vmem:[#allocation5 + $0x30] sm:$0xff]  ;;  %v577_v3 = vmov 0   ;;  %v150_v4 = vld [vmem:[%s119_s21] sm:$0xff]  ;;  %v667_v15 = vstv %s145_s0 }
  0x38   :  { %222 = vmatpush.bf16.msra.mxu0 %v445_v1  ;;  %457 = vset.pattern.permute.xlu0 %v577_v3  ;;  %v443_v5 = vld [vmem:[#allocation5 + $0x28] sm:$0xff]  ;;  %v442_v7 = vld [vmem:[#allocation5 + $0x20] sm:$0xff]  ;;  %v441_v8 = vld [vmem:[#allocation5 + $0x18] sm:$0xff]  ;;  %v290_v26 = vsub.f32 %v667_v15, %v150_v4 }
  0x39   :  { %458 = vset.pattern.permute.xlu2 %v577_v3  ;;  %238 = vperm.xlu0 %457, %v150_v4   ;;  %v661_v6 = vld [vmem:[%s119_s21 + $0x8] sm:$0xff]  ;;  %v440_v9 = vld [vmem:[#allocation5 + $0x10] sm:$0xff]  ;;  %v438_v11 = vld [vmem:[#allocation5] sm:$0xff] }
  0x3a   :  { %v439_v10 = vld [vmem:[#allocation5 + $0x8] sm:$0xff]  ;;  %v437_v12 = vld [vmem:[#allocation10] sm:$0xff]  ;;  %v251_v13 = vld [vmem:[%s692_s3] sm:$0xff]  ;;  %v291_v47 = vsub.f32 %v667_v15, %v661_v6 }
  0x3b   :  { %v284_v14 = vsub.f32 %v251_v13, %v150_v4  ;;  %vm282_vm0 = vcmp.lt.f32.partialorder %v251_v13, 0.5  ;;  %v252_v18 = vld [vmem:[%s692_s3 + $0x8] sm:$0xff]  ;;  %v254_v28 = vadd.f32 1.0, %v251_v13  ;;  %s578_s3 = smov 1  }
  0x3c   :  { %223 = vmatpush.bf16.msra.mxu0 %v444_v2  ;;  %v285_v19 = vsub.f32 %v252_v18, %v661_v6  ;;  %vm283_vm1 = vcmp.lt.f32.partialorder %v252_v18, 0.5  ;;  %v255_v48 = vadd.f32 1.0, %v252_v18 }
  0x3d   :  { %v286_v16 = vadd.f32 %v284_v14, %v667_v15 }
  0x3e   :  { %v287_v20 = vadd.f32 %v285_v19, %v667_v15  ;;  %v147_v19 = vld [vmem:[#allocation8 + $0x8] sm:$0xff] }
  0x3f   :  { %v288_v17 = vsel %vm282_vm0, 1.0, %v286_v16 }
  0x40   :  { %224 = vmatpush.bf16.msra.mxu0 %v443_v5  ;;  %459 = vrcp.f32 %v288_v17  ;;  %v289_v23 = vsel %vm283_vm1, 1.0, %v287_v20  ;;  %v303_v29 = vand.u32 2147483648, %v288_v17  ;;  %vm297_vm2 = vweird.f32 %v288_v17 }
  0x41   :  { %243 = vperm.xlu0 %457, %v661_v6   ;;  %461 = vrcp.f32 %v289_v23  ;;  %v301_v31 = vand.u32 2147483647, %v288_v17  ;;  %vm312_vm6 = vweird.f32 %v289_v23  ;;  %v316_v39 = vand.u32 2147483647, %v289_v23 }
  0x42   :  { %v304_v34 = vor.u32 1.1754944e-38, %v303_v29  ;;  %v318_v40 = vand.u32 2147483648, %v289_v23 }
  0x43   :  { %vm302_vm5 = vcmp.eq.f32.partialorder %v301_v31, 8.507059e+37  ;;  %vm317_vm9 = vcmp.eq.f32.partialorder %v316_v39, 8.507059e+37 }
  0x44   :  { %225 = vmatpush.bf16.msra.mxu0 %v442_v7  ;;  %v319_v49 = vor.u32 1.1754944e-38, %v318_v40 }
  0x46   :  { %v460_v21 = vpop.eup %459 }
  0x47   :  { %v293_v22 = vmul.f32 %v460_v21, %v288_v17  ;;  %vm298_vm3 = vweird.f32 %v460_v21  ;;  %v462_v32 = vpop.eup %461  ;;  %v146_v17 = vld [vmem:[#allocation8] sm:$0xff] }
  0x48   :  { %226 = vmatpush.bf16.msra.mxu0 %v441_v8  ;;  %vm299_vm4 = vmor %vm297_vm2, %vm298_vm3  ;;  %v308_v37 = vmul.f32 %v462_v32, %v289_v23  ;;  %vm313_vm7 = vweird.f32 %v462_v32  ;;  %v344_v23 = vmax.f32 %v147_v19, 0.0 }
  0x49   :  { %v294_v24 = vsub.f32 1.0, %v293_v22  ;;  %vm314_vm8 = vmor %vm312_vm6, %vm313_vm7 }
  0x4a   :  { %v309_v43 = vsub.f32 1.0, %v308_v37 }
  0x4b   :  { %v295_v25 = vmul.f32 %v460_v21, %v294_v24 }
  0x4c   :  { %227 = vmatpush.bf16.msra.mxu0 %v440_v9  ;;  %v310_v46 = vmul.f32 %v462_v32, %v309_v43 }
  0x4d   :  { %v296_v30 = vadd.f32 %v460_v21, %v295_v25 }
  0x4e   :  { %v311_v51 = vadd.f32 %v462_v32, %v310_v46 }
  0x4f   :  { %v300_v36 = vsel %vm299_vm4, %v460_v21, %v296_v30  ;;  %v343_v21 = vmax.f32 %v146_v17, 0.0 }
  0x50   :  { %228 = vmatpush.bf16.msra.mxu0 %v439_v10  ;;  %v305_v38 = vsel %vm302_vm5, %v304_v34, %v300_v36  ;;  %v315_v55 = vsel %vm314_vm8, %v462_v32, %v311_v51 }
  0x51   :  { %v306_v42 = vmul.f32 %v305_v38, %v290_v26  ;;  %v320_v56 = vsel %vm317_vm9, %v319_v49, %v315_v55 }
  0x52   :  { %v321_v58 = vmul.f32 %v320_v56, %v291_v47 }
  0x53   :  { %v322_v45 = vsub.f32 1.0, %v306_v42 }
  0x54   :  { %229 = vmatpush.bf16.msra.mxu0 %v438_v11  ;;  %v323_v61 = vsub.f32 1.0, %v321_v58 }
  0x55   :  { %v324_v50 = vsel %vm282_vm0, 0.0, %v322_v45 }
  0x56   :  { %331 = vperm.xlu2 %458, %v324_v50   ;;  %v325_v63 = vsel %vm283_vm1, 0.0, %v323_v61 }
  0x57   :  { %230 = vmatmul.bf16.vlgmr.msra.gmra.mxu0 %v437_v12  ;;  %v326_v12 = vlaneseq }
  0x59   :  { %v327_v14 = vand.u32 127, %v326_v12 }
  0x5b   :  { %vm328_vm10 = vcmp.eq.s32.totalorder %v327_v14, 0 }
  0x5e   :  { %336 = vperm.xlu2 %458, %v325_v63  }
  0xab   :  { %v239_v27 = vpop.permute.xlu0 %238 }
  0xb0   :  { %v332_v13 = vpop.permute.xlu2 %331 }
  0xb3   :  { %v244_v52 = vpop.permute.xlu0 %243 }
  0xb8   :  { %v337_v20 = vpop.permute.xlu2 %336 }
  0xd4   :  { %v231_v33 = vpop.f32.mrf.mxu0 }
  0xd5   :  { %v246_v35 = vadd.f32 %v239_v27, %v231_v33 }
  0xd7   :  { %v256_v41 = vsub.f32 %v254_v28, %v246_v35  ;;  %v261_v1 = vsub.f32 %v667_v15, %v246_v35 }
  0xd9   :  { %v259_v44 = vadd.f32 %v667_v15, %v256_v41 }
  0xdb   :  { %463 = vrcp.f32 %v259_v44 }
  0xdc   :  { %v233_v53 = vpop.f32.mrf.mxu0 }
  0xdd   :  { %v247_v54 = vadd.f32 %v244_v52, %v233_v53 }
  0xdf   :  { %v257_v57 = vsub.f32 %v255_v48, %v247_v54  ;;  %v262_v8 = vsub.f32 %v667_v15, %v247_v54 }
  0xe1   :  { %v464_v59 = vpop.eup %463  ;;  %v260_v60 = vadd.f32 %v667_v15, %v257_v57 }
  0xe2   :  { %v265_v62 = vmul.f32 %v464_v59, %v259_v44 }
  0xe3   :  { %465 = vrcp.f32 %v260_v60 }
  0xe4   :  { %v267_v0 = vsub.f32 2.0, %v265_v62 }
  0xe6   :  { %v269_v2 = vmul.f32 %v464_v59, %v267_v0 }
  0xe8   :  { %v271_v3 = vmul.f32 %v269_v2, %v261_v1 }
  0xe9   :  { %v466_v4 = vpop.eup %465 }
  0xea   :  { %v266_v5 = vmul.f32 %v466_v4, %v260_v60  ;;  %v273_v6 = vsub.f32 1.0, %v271_v3 }
  0xec   :  { %v268_v7 = vsub.f32 2.0, %v266_v5  ;;  %275 = vrot.lane.b32.xlu1 %v273_v6, %s578_s3 }
  0xee   :  { %v270_v9 = vmul.f32 %v466_v4, %v268_v7 }
  0xf0   :  { %v272_v10 = vmul.f32 %v270_v9, %v262_v8 }
  0xf2   :  { %v274_v11 = vsub.f32 1.0, %v272_v10 }
  0xf4   :  { %277 = vrot.lane.b32.xlu1 %v274_v11, %s578_s3 }
 0x15e   :  { %v276_v16 = vpop.permute.xlu1 %275 }
 0x15f   :  { %v339_v18 = vsel %vm328_vm10, %v332_v13, %v276_v16 }
 0x160   :  { %v341_v22 = vsub.f32 %v273_v6, %v339_v18 }
 0x162   :  { %v345_v15 = vmul.f32 %v343_v21, %v341_v22 }
 0x166   :  { %v278_v24 = vpop.permute.xlu1 %277 }
 0x167   :  { %v340_v25 = vsel %vm328_vm10, %v337_v20, %v278_v24 }
 0x168   :  { %v342_v26 = vsub.f32 %v274_v11, %v340_v25 }
 0x16a   :  { %v346_v27 = vmul.f32 %v344_v23, %v342_v26 }
 0x16c   :  { %v347_v28 = vadd.f32 %v346_v27, %v345_v15 }
 0x16e   :  { %v348_v29 = vrot.slane %v347_v28, 4 }
 0x170   :  { %v349_v30 = vadd.f32 %v348_v29, %v347_v28 }
 0x172   :  { %v350_v31 = vrot.slane %v349_v30, 2 }
 0x174   :  { %v351_v32 = vadd.f32 %v350_v31, %v349_v30 }
 0x176   :  { %v352_v33 = vrot.slane %v351_v32, 1 }
 0x178   :  { %v353_v34 = vadd.f32 %v352_v33, %v351_v32 }
 0x17a   :  { %354 = vst [vmem:[#allocation11] sm:$0x1] %v353_v34 }
 0x17b PF:  { %s362_s29 = sshll.u32 %s696_s7, 4  ;;  %s579_s8 = smov [#allocation11]   ;;  %s363_s29 = int_to_ptr.hbm [resolvable:$true] %s362_s29 }
 0x17c   :  { %s360_s9 = sshll.u32 %s579_s8, 4  ;;  %s361_s9 = int_to_ptr.vmem [resolvable:$true] %s360_s9 }
 0x17d   :  { %365 = dma.vmem_to_hbm [thread:$0]  %s361_s9, 16, %s363_s29, [#allocation7]  }
 0x17e   :  { %567 = dma.done.wait [#allocation7], 16  }
 0x17f   :  { %568 = vsyncadd [#allocation7], 4294967280 }
 0x180   :  { %370 = vsyncpa [#allocation6], 1 }
 0x181   :  { %371 = vsyncpa [#allocation9], 1 }
 0x182   :  { %372 = vsyncpa [#allocation7], 1 }

</bundles_post_ra>
